<compile_context>
chip_gen: v7x
topology: tpu7x:2x2x1
jax: 0.10.0
libtpu: 0.0.40
codegen_flags: <defaults>
</compile_context>

<pallas_src>
import functools

import jax
import jax.numpy as jnp
from jax import lax
from jax.experimental import pallas as pl
from jax.experimental.pallas import tpu as pltpu

_EPS = 1e-8          # torch.cosine_similarity default eps
_EPS2 = _EPS * _EPS  # clamp (||x1||*||x2||)^2 at eps^2  ==  clamp product at eps


def _stage1_loss_kernel(x1_ref, x2_ref, lab_ref, out_ref, *, n_rows):
    """One row tile: partial sum of (cos_sim(row) - label)^2 over valid rows."""
    i = pl.program_id(0)
    tn = x1_ref.shape[0]

    # Load in native dtype, compute in f32 (v5e has no bf16 VPU/EUP).
    x1 = x1_ref[...].astype(jnp.float32)    # (tn, d)
    x2 = x2_ref[...].astype(jnp.float32)    # (tn, d)
    lab = lab_ref[...].astype(jnp.float32)  # (tn, 1)

    dot = jnp.sum(x1 * x2, axis=-1, keepdims=True)    # (tn, 1)
    n1sq = jnp.sum(x1 * x1, axis=-1, keepdims=True)   # (tn, 1)
    n2sq = jnp.sum(x2 * x2, axis=-1, keepdims=True)   # (tn, 1)

    # torch semantics: sim = dot / max(||x1|| * ||x2||, eps)
    #   -> clamp the product of squared norms at eps^2, single rsqrt (EUP).
    inv_norm = lax.rsqrt(jnp.maximum(n1sq * n2sq, _EPS2))
    sim = dot * inv_norm

    diff = sim - lab
    # Ragged last tile: rows >= n_rows read out-of-bounds garbage (possibly
    # NaN/Inf). Use a SELECT (not multiply-by-mask) so it cannot propagate.
    row = i * tn + lax.broadcasted_iota(jnp.int32, (tn, 1), 0)
    sq = jnp.where(row < n_rows, diff * diff, jnp.float32(0.0))

    out_ref[0, 0] = jnp.sum(sq)   # one partial sum per tile


def _round_up(x, m):
    return ((x + m - 1) // m) * m


def _choose_row_tile(n, d, in_itemsize, lab_itemsize, *,
                     target_block_bytes, vmem_budget_bytes):
    """Rows per tile, sized by bytes (not a fixed row cap)."""
    tn = max(8, target_block_bytes // max(1, d * in_itemsize))

    # Double-buffered VMEM footprint per pipeline stage:
    #   inputs: 2 arrays x 2 buffers x tn*d*itemsize
    #   labels: 2 buffers x tn x 128 lanes x itemsize
    #           (a (tn, 1) block is lane-padded to the native (8,128) tile)
    def vmem_bytes(t):
        return 4 * t * d * in_itemsize + 2 * t * 128 * lab_itemsize

    while tn > 8 and vmem_bytes(tn) > vmem_budget_bytes:
        tn //= 2

    tn = min(tn, _round_up(n, 8))
    if tn >= 32:
        tn = (tn // 32) * 32        # keep sub-32-bit dtypes fully packed
    else:
        tn = max(8, (tn // 8) * 8)  # sublane granularity
    return tn


def stage1_loss(promote_drug_1, promote_drug_2, labels, *,
                target_block_bytes=2 << 20, vmem_budget_bytes=24 << 20):
    """JAX/Pallas equivalent of PyTorch stage1_loss.forward.

    promote_drug_1, promote_drug_2: (N, D) arrays (any float dtype; bf16 ok)
    labels: (N,) array
    returns: scalar float32 loss
    """
    n, d = promote_drug_1.shape
    labels_2d = labels.reshape(n, 1)

    in_itemsize = max(jnp.dtype(promote_drug_1.dtype).itemsize,
                      jnp.dtype(promote_drug_2.dtype).itemsize)
    lab_itemsize = jnp.dtype(labels_2d.dtype).itemsize
    tn = _choose_row_tile(n, d, in_itemsize, lab_itemsize,
                          target_block_bytes=target_block_bytes,
                          vmem_budget_bytes=vmem_budget_bytes)

    num_tiles = pl.cdiv(n, tn)
    kernel = functools.partial(_stage1_loss_kernel, n_rows=n)

    partials = pl.pallas_call(
        kernel,
        out_shape=jax.ShapeDtypeStruct((num_tiles, 1), jnp.float32),
        grid_spec=pltpu.PrefetchScalarGridSpec(
            num_scalar_prefetch=0,
            grid=(num_tiles,),
            in_specs=[
                pl.BlockSpec((tn, d), lambda i: (i, 0)),
                pl.BlockSpec((tn, d), lambda i: (i, 0)),
                pl.BlockSpec((tn, 1), lambda i: (i, 0)),
            ],
            # One scalar partial sum per tile -> no carried state, so the grid
            # axis can be "parallel" (v7x megacore shards the row range).
            out_specs=pl.BlockSpec((1, 1), lambda i: (i, 0),
                                   memory_space=pltpu.MemorySpace.SMEM),
        ),
        compiler_params=pltpu.CompilerParams(
            dimension_semantics=("parallel",),
            vmem_limit_bytes=32 * 1024 * 1024),
    )(promote_drug_1, promote_drug_2, labels_2d)

    return jnp.sum(partials) / jnp.float32(n)


def _reference(x1, x2, labels):
    # Matches torch.cosine_similarity: the product of norms is clamped at eps.
    dot = jnp.sum(x1 * x2, axis=1)
    denom = jnp.maximum(
        jnp.linalg.norm(x1, axis=1) * jnp.linalg.norm(x2, axis=1), _EPS)
    sim = dot / denom
    return jnp.mean((sim - labels) ** 2)


if __name__ == "__main__":
    key = jax.random.PRNGKey(0)
    k1, k2, k3 = jax.random.split(key, 3)

    # Small shapes consistent with the module: batch of 8 drug-pair
    # embeddings of width 32.
    N, D = 8, 32
    promote_drug_1 = jax.random.normal(k1, (N, D), dtype=jnp.float32)
    promote_drug_2 = jax.random.normal(k2, (N, D), dtype=jnp.float32)
    labels = jax.random.uniform(k3, (N,), dtype=jnp.float32)

    loss = jax.block_until_ready(
        stage1_loss(promote_drug_1, promote_drug_2, labels))
    ref = _reference(promote_drug_1, promote_drug_2, labels)
    assert jnp.allclose(loss, ref, atol=1e-5, rtol=1e-5), (loss, ref)

    # Larger, non-tile-multiple bf16 case: exercises the multi-tile parallel
    # grid, in-kernel ragged-row masking (no wrapper pad) and per-tile
    # partial sums. Small target block so several tiles are produced.
    N2, D2 = 1000, 32
    k4, k5, k6 = jax.random.split(k3, 3)
    y1 = jax.random.normal(k4, (N2, D2), dtype=jnp.float32).astype(jnp.bfloat16)
    y2 = jax.random.normal(k5, (N2, D2), dtype=jnp.float32).astype(jnp.bfloat16)
    lab2 = jax.random.uniform(k6, (N2,), dtype=jnp.float32)

    loss2 = jax.block_until_ready(
        stage1_loss(y1, y2, lab2, target_block_bytes=8 * 1024))
    ref2 = _reference(y1.astype(jnp.float32), y2.astype(jnp.float32), lab2)
    assert jnp.allclose(loss2, ref2, atol=2e-3, rtol=2e-3), (loss2, ref2)

    print("KERNEL_OK")
</pallas_src>

<mosaic_0001>
module attributes {stable_mosaic.version = 11 : i64} {
  func.func @_stage1_loss_kernel(%arg0: i32, %arg1: memref<8x32xf32, #tpu.memory_space<vmem>>, %arg2: memref<8x32xf32, #tpu.memory_space<vmem>>, %arg3: memref<8x1xf32, #tpu.memory_space<vmem>>, %arg4: memref<1x1xf32, #tpu.memory_space<smem>>) attributes {dimension_semantics = [#tpu.dimension_semantics<parallel>], iteration_bounds = array<i64: 1>, scalar_prefetch = 0 : i64, scratch_operands = 0 : i64, tpu.core_type = #tpu.core_type<tc>, window_params = [{transform_indices = @transform_0, window_bounds = array<i64: 8, 32>}, {transform_indices = @transform_1, window_bounds = array<i64: 8, 32>}, {transform_indices = @transform_2, window_bounds = array<i64: 8, 1>}, {transform_indices = @transform_3, window_bounds = array<i64: 1, 1>}]} {
    %c0 = arith.constant 0 : index
    %c0_0 = arith.constant 0 : index
    %0 = vector.load %arg1[%c0, %c0_0] : memref<8x32xf32, #tpu.memory_space<vmem>>, vector<8x32xf32>
    %c0_1 = arith.constant 0 : index
    %c0_2 = arith.constant 0 : index
    %1 = vector.load %arg2[%c0_1, %c0_2] : memref<8x32xf32, #tpu.memory_space<vmem>>, vector<8x32xf32>
    %c0_3 = arith.constant 0 : index
    %c0_4 = arith.constant 0 : index
    %2 = vector.load %arg3[%c0_3, %c0_4] : memref<8x1xf32, #tpu.memory_space<vmem>>, vector<8x1xf32>
    %3 = arith.mulf %0, %1 : vector<8x32xf32>
    %cst = arith.constant dense<0.000000e+00> : vector<8xf32>
    %4 = vector.multi_reduction <add>, %3, %cst [1] : vector<8x32xf32> to vector<8xf32>
    %5 = vector.shape_cast %4 : vector<8xf32> to vector<8x1xf32>
    %6 = arith.mulf %0, %0 : vector<8x32xf32>
    %cst_5 = arith.constant dense<0.000000e+00> : vector<8xf32>
    %7 = vector.multi_reduction <add>, %6, %cst_5 [1] : vector<8x32xf32> to vector<8xf32>
    %8 = vector.shape_cast %7 : vector<8xf32> to vector<8x1xf32>
    %9 = arith.mulf %1, %1 : vector<8x32xf32>
    %cst_6 = arith.constant dense<0.000000e+00> : vector<8xf32>
    %10 = vector.multi_reduction <add>, %9, %cst_6 [1] : vector<8x32xf32> to vector<8xf32>
    %11 = vector.shape_cast %10 : vector<8xf32> to vector<8x1xf32>
    %12 = arith.mulf %8, %11 : vector<8x1xf32>
    %cst_7 = arith.constant 1.000000e-16 : f32
    %13 = vector.broadcast %cst_7 : f32 to vector<8x1xf32>
    %14 = arith.maximumf %12, %13 : vector<8x1xf32>
    %15 = math.rsqrt %14 : vector<8x1xf32>
    %16 = arith.mulf %5, %15 : vector<8x1xf32>
    %17 = arith.subf %16, %2 : vector<8x1xf32>
    %c8_i32 = arith.constant 8 : i32
    %18 = arith.muli %arg0, %c8_i32 : i32
    %19 = tpu.iota {dimensions = array<i32: 0>} : vector<8x1xi32>
    %20 = vector.broadcast %18 : i32 to vector<8x1xi32>
    %21 = arith.addi %20, %19 : vector<8x1xi32>
    %c8_i32_8 = arith.constant 8 : i32
    %22 = vector.broadcast %c8_i32_8 : i32 to vector<8x1xi32>
    %23 = arith.cmpi slt, %21, %22 : vector<8x1xi32>
    %24 = arith.mulf %17, %17 : vector<8x1xf32>
    %cst_9 = arith.constant 0.000000e+00 : f32
    %25 = vector.broadcast %cst_9 : f32 to vector<8x1xf32>
    %26 = arith.select %23, %24, %25 : vector<8x1xi1>, vector<8x1xf32>
    %27 = vector.shape_cast %26 : vector<8x1xf32> to vector<1x8x1xf32>
    %cst_10 = arith.constant dense<0.000000e+00> : vector<1xf32>
    %28 = vector.multi_reduction <add>, %27, %cst_10 [1, 2] : vector<1x8x1xf32> to vector<1xf32>
    %29 = vector.shape_cast %28 : vector<1xf32> to vector<1x1x1xf32>
    %30 = vector.extract %29[0, 0, 0] : f32 from vector<1x1x1xf32>
    %c0_11 = arith.constant 0 : index
    %c0_12 = arith.constant 0 : index
    %31 = memref.load %arg4[%c0_11, %c0_12] : memref<1x1xf32, #tpu.memory_space<smem>>
    memref.store %30, %arg4[%c0_11, %c0_12] : memref<1x1xf32, #tpu.memory_space<smem>>
    return
  }
  func.func @transform_0(%arg0: i32) -> (i32, i32) {
    %c0_i32 = arith.constant 0 : i32
    %c0_i32_0 = arith.constant 0 : i32
    return %arg0, %c0_i32 : i32, i32
  }
  func.func @transform_1(%arg0: i32) -> (i32, i32) {
    %c0_i32 = arith.constant 0 : i32
    %c0_i32_0 = arith.constant 0 : i32
    return %arg0, %c0_i32 : i32, i32
  }
  func.func @transform_2(%arg0: i32) -> (i32, i32) {
    %c0_i32 = arith.constant 0 : i32
    %c0_i32_0 = arith.constant 0 : i32
    return %arg0, %c0_i32 : i32, i32
  }
  func.func @transform_3(%arg0: i32) -> (i32, i32) {
    %c0_i32 = arith.constant 0 : i32
    %c0_i32_0 = arith.constant 0 : i32
    return %arg0, %c0_i32 : i32, i32
  }
}

</mosaic_0001>

<bundles_post_ra>
// kernel: tpu_custom_call.1
= control target key start
LH: loop header
LB: loop body
LE: loop exit
PB: predicated region body
PF: predicated region fallthrough
CT: control target
= control target key end

     0   :  { %8 = vsyncpa [#allocation3], 0  ;;  %s177_s0 = inlined_call_operand.vmem [shape: f32[8,32], index: 0, kind: input, shape index: {}]   ;;  %s178_s1 = inlined_call_operand.hbm [shape: f32[8,32], index: 1, kind: input, shape index: {}]   ;;  %s179_s2 = inlined_call_operand.vmem [shape: f32[8,1], index: 2, kind: input, shape index: {}]   ;;  %s180_s3 = inlined_call_operand.hbm [shape: f32[1,1], index: 3, kind: output, shape index: {}]  }
   0x1   :  { %9 = vsyncpa [#allocation4], 0  ;;  %s125_s12 = smov [#allocation2]   ;;  %s89_s16 = scalar_lea.hbm %s178_s1, 128 }
   0x2   :  { %s18_s13 = sshll.u32 %s125_s12, 4  ;;  %p90_p0 = scmp.ne.s32.totalorder %s178_s1, %s89_s16  ;;  %s19_s13 = int_to_ptr.vmem [resolvable:$true] %s18_s13 }
   0x3   :  { %p93_p1 = scmp.lt.u32.totalorder %s89_s16, %s178_s1 }
   0x5   :  { %p95_p2 = pnand %p93_p1, %p90_p0 }
   0x7   :  { %98 = shalt.err (!%p95_p2)
}
   0x8   :  { %s99_s21 = scalar_lea.vmem %s19_s13, 128  ;;  %p104_p4 = scmp.lt.s32.totalorder %s19_s13, %s19_s13 }
   0x9   :  { %p100_p3 = scmp.ne.s32.totalorder %s19_s13, %s99_s21  ;;  %p105_p5 = scmp.lt.s32.totalorder %s99_s21, %s99_s21 }
   0xb   :  { %p106_p6 = por %p105_p5, %p104_p4 }
   0xd   :  { %p107_p7 = pnand %p106_p6, %p100_p3 }
   0xf   :  { %110 = shalt.err (!%p107_p7)
}
  0x10   :  { %21 = dma.hbm_to_vmem [thread:$0]  %s178_s1, 128, %s19_s13, [#allocation3]  }
  0x11   :  { %121 = dma.done.wait [#allocation3], 128  }
  0x12   :  { %122 = vsyncadd [#allocation3], 4294967168  ;;  %v27_v0 = vld [vmem:[%s177_s0] sm:$0xff]  ;;  %vm31_vm0 = vcmask 261120   ;;  %vm56_vm1 = vcmask 7168  }
  0x13   :  { %v28_v1 = vld [vmem:[#allocation2] sm:$0xff]  ;;  %v35_v2 = vmul.f32 %v27_v0, %v27_v0 }
  0x14   :  { %v39_v3 = vmul.f32 %v28_v1, %v28_v1  ;;  %v30_v4 = vmul.f32 %v28_v1, %v27_v0  ;;  %v29_v14 = vld [vmem:[%s179_s2] sm:$0xff]  ;;  %s111_s2 = scalar_lea.hbm %s180_s3, 16 }
  0x15   :  { %v36_v5 = vsel %vm31_vm0, %v35_v2, 0.0  ;;  %p112_p8 = scmp.ne.s32.totalorder %s180_s3, %s111_s2  ;;  %p115_p9 = scmp.lt.u32.totalorder %s111_s2, %s180_s3 }
  0x16   :  { %v32_v6 = vsel %vm31_vm0, %v30_v4, 0.0  ;;  %37 = vadd.xlane.f32.xlu0 %v36_v5  ;;  %v40_v7 = vsel %vm31_vm0, %v39_v3, 0.0 }
  0x17   :  { %33 = vadd.xlane.f32.xlu1 %v32_v6  ;;  %p117_p10 = pnand %p115_p9, %p112_p8 }
  0x1a   :  { %41 = vadd.xlane.f32.xlu0 %v40_v7 }
  0xa3   :  { %v38_v8 = vpop.xlane.xlu0 %37 }
  0xa4   :  { %v34_v12 = vpop.xlane.xlu1 %33 }
  0xa7   :  { %v42_v9 = vpop.xlane.xlu0 %41 }
  0xa8   :  { %v43_v10 = vmul.f32 %v42_v9, %v38_v8 }
  0xaa   :  { %v44_v11 = vmax.f32 %v43_v10, 1e-16 }
  0xac   :  { %87 = vrsqrt.f32 %v44_v11 }
  0xb6   :  { %v88_v13 = vpop.eup %87 }
  0xb7   :  { %v46_v15 = vmul.f32 %v88_v13, %v34_v12 }
  0xb9   :  { %v47_v16 = vsub.f32 %v46_v15, %v29_v14 }
  0xbb   :  { %v54_v17 = vmul.f32 %v47_v16, %v47_v16 }
  0xbd   :  { %v57_v18 = vsel %vm56_vm1, %v54_v17, 0.0 }
  0xbe   :  { %58 = vadd.xlane.f32.xlu1 %v57_v18 }
 0x14b   :  { %v59_v19 = vpop.xlane.xlu1 %58 }
 0x14c   :  { %v60_v20 = vrot.slane %v59_v19, 4 }
 0x14e   :  { %v61_v21 = vadd.f32 %v60_v20, %v59_v19 }
 0x150   :  { %v62_v22 = vrot.slane %v61_v21, 2 }
 0x152   :  { %v63_v23 = vadd.f32 %v62_v22, %v61_v21 }
 0x154   :  { %v64_v24 = vrot.slane %v63_v23, 1 }
 0x156   :  { %v65_v25 = vadd.f32 %v64_v24, %v63_v23 }
 0x158   :  { %83 = vpush %v65_v25 }
 0x189   :  { %s84_s26 = spop %83 }
 0x18a   :  { %68 = sst [smem:[#allocation5]] %s84_s26 }
 0x18b   :  { %120 = shalt.err (!%p117_p10)
}
 0x18c   :  { %s126_s6 = smov [#allocation5]  }
 0x18d   :  { %76 = dma.smem_to_hbm %s126_s6, 16, %s180_s3, [#allocation4]  }
 0x18e   :  { %123 = dma.done.wait [#allocation4], 16  }
 0x18f   :  { %124 = vsyncadd [#allocation4], 4294967280 }
 0x190   :  { %80 = sfence }
 0x191   :  { %81 = vsyncpa [#allocation3], 1 }
 0x192   :  { %82 = vsyncpa [#allocation4], 1 }

</bundles_post_ra>
